<compile_context>
chip_gen: v7x
topology: tpu7x:2x2x1
jax: 0.10.0
libtpu: 0.0.40
codegen_flags: <defaults>
</compile_context>

<pallas_src>
import functools

import jax
import jax.numpy as jnp
from jax.experimental import pallas as pl
from jax.experimental.pallas import tpu as pltpu


def _round_up(x, m):
    return ((x + m - 1) // m) * m


def _round_down(x, m):
    return (x // m) * m


def _layer_norm_cols(x, gamma, beta, eps=1e-5):
    """Single-pass LayerNorm over the feature axis (axis 0) of a (feat, edge) block."""
    mean = jnp.mean(x, axis=0, keepdims=True)
    mean_sq = jnp.mean(x * x, axis=0, keepdims=True)
    var = jnp.maximum(mean_sq - mean * mean, 0.0)
    return (x - mean) * jax.lax.rsqrt(var + eps) * gamma + beta


def mlp_head_kernel(hs_ref, hd_ref, w1_ref, w2_ref, side_ref, out_ref, *,
                    use_layer_norm, low_precision_product):
    # Edge feature: elementwise product of src/dst node features (feature-major
    # (F, TE) so the edge axis is the TPU lane axis).  bf16 product on chips
    # with a bf16 VALU (v6e/v7x); f32 product otherwise (v5e-safe).
    if low_precision_product:
        x = (hs_ref[...] * hd_ref[...]).astype(w1_ref.dtype)
    else:
        x = (hs_ref[...].astype(jnp.float32) *
             hd_ref[...].astype(jnp.float32)).astype(w1_ref.dtype)

    # Packed side params: [b1, ln1_g, ln1_b, b2, ln2_g, ln2_b, w3, b3] as (H, 8) f32.
    side = side_ref[...]
    b1, g1, be1 = side[:, 0:1], side[:, 1:2], side[:, 2:3]
    b2, g2, be2 = side[:, 3:4], side[:, 4:5], side[:, 5:6]
    w3, b3 = side[:, 6:7], side[0:1, 7:8]

    # Layer 1: (H, F) @ (F, TE) -> (H, TE), f32 accumulation on the MXU.
    h1 = jnp.dot(w1_ref[...], x, preferred_element_type=jnp.float32) + b1
    if use_layer_norm:
        h1 = _layer_norm_cols(h1, g1, be1)
    h1 = jnp.maximum(h1, 0.0).astype(w2_ref.dtype)

    # Layer 2: (H, H) @ (H, TE) -> (H, TE)
    h2 = jnp.dot(w2_ref[...], h1, preferred_element_type=jnp.float32) + b2
    if use_layer_norm:
        h2 = _layer_norm_cols(h2, g2, be2)
    h2 = jnp.maximum(h2, 0.0)

    # Layer 3 (H -> 1): degenerate matmul moved off the MXU.  VPU multiply +
    # sublane (XLU) reduce yields a lane-dense (1, TE) row directly.
    s = jnp.sum(h2 * w3, axis=0, keepdims=True) + b3
    out_ref[...] = jax.nn.sigmoid(s)                                   # (1, TE)


def _low_precision_product_ok(compute_dtype):
    """bf16 elementwise product only where the VALU supports bf16 (v6e / v7x)."""
    if jnp.dtype(compute_dtype) == jnp.dtype(jnp.float32):
        return False
    try:
        kind = jax.devices()[0].device_kind.lower()
    except Exception:
        return False
    return ("v6" in kind) or ("v7" in kind)


def _derive_tile_e(E, F, H, in_bytes, requested=None,
                   vmem_budget_bytes=20 * (1 << 20), max_tile=8192):
    """Largest edge tile (multiple of 128/256) whose pipelined VMEM fits the budget."""
    e_ceil = _round_up(max(int(E), 1), 128)
    # Double-buffered (F, tile) inputs (hs, hd) + ~6 f32 (H, tile) temporaries
    # (x, h1, h2, LN temps) + output, per edge of tile.
    per_edge = 2 * 2 * F * in_bytes + 6 * H * 4 + 2 * 4
    cap = max(128, _round_down(vmem_budget_bytes // per_edge, 128))
    tile = min(cap, max_tile, e_ceil)
    if requested is not None:
        tile = min(tile, max(128, _round_down(int(requested), 128)))
    # Keep >= 2 "parallel" edge tiles when there is enough work so both v7x
    # TensorCores get fed.
    if e_ceil >= 256:
        tile = min(tile, max(128, _round_down(e_ceil // 2, 128)))
    # Prefer multiples of 256 (v6e/v7x MXU lane width) once tiles are large.
    if tile >= 256:
        tile = _round_down(tile, 256)
    return tile


def mlp_prediction_head(h, src_idx, dst_idx, params, *, use_layer_norm=True,
                        tile_e=None, compute_dtype=jnp.bfloat16):
    """h: [N, h_feats] node features; src_idx/dst_idx: [E] edge endpoints."""
    E = int(src_idx.shape[0])
    F = int(h.shape[1])
    H = int(params["w1"].shape[0])
    in_bytes = jnp.dtype(compute_dtype).itemsize

    tile = _derive_tile_e(E, F, H, in_bytes, requested=tile_e)
    e_pad = _round_up(max(E, 1), tile)
    pad = e_pad - E

    src_p = jnp.pad(src_idx, (0, pad))       # pad with node 0 (a valid index)
    dst_p = jnp.pad(dst_idx, (0, pad))

    # Gather per-edge node features directly in feature-major (F, E_pad) layout:
    # transpose only the small (N, F) node table, then gather columns.  No
    # full-size (E, F) -> (F, E) transpose copy through HBM.
    # TODO(synk): in-kernel DMA gather (PrefetchScalarGridSpec + pl.ANY node
    # table) would avoid materializing these (F, E_pad) intermediates entirely.
    h_t = h.astype(compute_dtype).T                       # (F, N)
    hs_t = jnp.take(h_t, src_p, axis=1)                   # (F, E_pad)
    hd_t = jnp.take(h_t, dst_p, axis=1)                   # (F, E_pad)

    f32 = jnp.float32
    w1 = params["w1"].astype(compute_dtype)               # (H, F) torch-native layout
    w2 = params["w2"].astype(compute_dtype)               # (H, H)
    side = jnp.concatenate(
        [params["b1"].astype(f32).reshape(H, 1),
         params["ln1_g"].astype(f32).reshape(H, 1),
         params["ln1_b"].astype(f32).reshape(H, 1),
         params["b2"].astype(f32).reshape(H, 1),
         params["ln2_g"].astype(f32).reshape(H, 1),
         params["ln2_b"].astype(f32).reshape(H, 1),
         params["w3"].astype(f32).reshape(H, 1),
         jnp.broadcast_to(params["b3"].astype(f32).reshape(1, 1), (H, 1))],
        axis=1)                                           # (H, 8)

    # Explicit scoped-VMEM limit (v5e default scoped limit is only 16 MiB;
    # v7x physical is 64 MiB -> cap below that with headroom).
    est_vmem = (2 * 2 * F * tile * in_bytes + 6 * H * tile * 4 + 2 * tile * 4
                + (H * F + H * H) * in_bytes + H * 8 * 4 + (1 << 16))
    vmem_limit = int(min(max(4 * est_vmem, 32 << 20), 56 << 20))

    flops = 2 * e_pad * (F + H * F + H * H + H)
    transcendentals = e_pad * (4 if use_layer_norm else 1)   # 2x rsqrt + exp-ish
    bytes_accessed = ((2 * e_pad * F + H * F + H * H) * in_bytes
                      + H * 8 * 4 + e_pad * 4)

    kernel = functools.partial(
        mlp_head_kernel,
        use_layer_norm=use_layer_norm,
        low_precision_product=_low_precision_product_ok(compute_dtype))

    edge_tile = lambda i: (0, i)
    full = lambda i: (0, 0)

    out = pl.pallas_call(
        kernel,
        out_shape=jax.ShapeDtypeStruct((1, e_pad), jnp.float32),
        grid=(e_pad // tile,),
        in_specs=[
            pl.BlockSpec((F, tile), edge_tile),   # h_src (feature-major)
            pl.BlockSpec((F, tile), edge_tile),   # h_dst (feature-major)
            pl.BlockSpec((H, F), full),           # W1
            pl.BlockSpec((H, H), full),           # W2
            pl.BlockSpec((H, 8), full),           # packed b1,ln1,b2,ln2,w3,b3
        ],
        out_specs=pl.BlockSpec((1, tile), edge_tile),   # lane-dense scores
        compiler_params=pltpu.CompilerParams(
            dimension_semantics=("parallel",),
            vmem_limit_bytes=vmem_limit),
        cost_estimate=pl.CostEstimate(
            flops=int(flops),
            transcendentals=int(transcendentals),
            bytes_accessed=int(bytes_accessed)),
    )(hs_t, hd_t, w1, w2, side)

    return out[0, :E]                                    # drop pad, .squeeze(1)


def make_params(key, h_feats, hidden, dtype=jnp.float32):
    ks = jax.random.split(key, 6)
    s1 = 1.0 / jnp.sqrt(h_feats)
    s2 = 1.0 / jnp.sqrt(hidden)
    return {
        # Linear weights in torch-native [out_features, in_features] layout.
        "w1": jax.random.uniform(ks[0], (hidden, h_feats), dtype, -s1, s1),
        "b1": jax.random.uniform(ks[1], (hidden, 1), dtype, -s1, s1),
        "ln1_g": jnp.ones((hidden, 1), dtype),
        "ln1_b": jnp.zeros((hidden, 1), dtype),
        "w2": jax.random.uniform(ks[2], (hidden, hidden), dtype, -s2, s2),
        "b2": jax.random.uniform(ks[3], (hidden, 1), dtype, -s2, s2),
        "ln2_g": jnp.ones((hidden, 1), dtype),
        "ln2_b": jnp.zeros((hidden, 1), dtype),
        # torch's W3 is (1, hidden); stored transposed as (hidden, 1).
        "w3": jax.random.uniform(ks[4], (hidden, 1), dtype, -s2, s2),
        "b3": jax.random.uniform(ks[5], (1, 1), dtype, -s2, s2),
    }


def _reference(h, src_idx, dst_idx, p, use_layer_norm=True):
    def ln(x, g, b, eps=1e-5):
        m = jnp.mean(x, axis=-1, keepdims=True)
        v = jnp.mean((x - m) ** 2, axis=-1, keepdims=True)
        return (x - m) * jax.lax.rsqrt(v + eps) * g + b

    x = h[src_idx] * h[dst_idx]                           # (E, F)
    h1 = x @ p["w1"].T + p["b1"][:, 0]
    if use_layer_norm:
        h1 = ln(h1, p["ln1_g"][:, 0], p["ln1_b"][:, 0])
    h1 = jnp.maximum(h1, 0.0)
    h2 = h1 @ p["w2"].T + p["b2"][:, 0]
    if use_layer_norm:
        h2 = ln(h2, p["ln2_g"][:, 0], p["ln2_b"][:, 0])
    h2 = jnp.maximum(h2, 0.0)
    return jax.nn.sigmoid(h2 @ p["w3"] + p["b3"][0])[:, 0]


if __name__ == "__main__":
    key = jax.random.PRNGKey(0)
    k_h, k_p, k_s, k_d, k_h2, k_p2, k_s2, k_d2 = jax.random.split(key, 8)

    # --- small config: deliberately not tile-aligned -> exercises padding ---
    h_feats, hidden, num_nodes, num_edges = 32, 32, 16, 20
    h = jax.random.normal(k_h, (num_nodes, h_feats), jnp.float32)
    src_idx = jax.random.randint(k_s, (num_edges,), 0, num_nodes)
    dst_idx = jax.random.randint(k_d, (num_edges,), 0, num_nodes)
    params = make_params(k_p, h_feats, hidden)
    ref = _reference(h, src_idx, dst_idx, params, use_layer_norm=True)

    # f32 path: tight tolerance vs reference.
    scores_f32 = jax.block_until_ready(
        mlp_prediction_head(h, src_idx, dst_idx, params,
                            use_layer_norm=True, compute_dtype=jnp.float32))
    assert scores_f32.shape == (num_edges,)
    assert jnp.allclose(scores_f32, ref, atol=1e-4, rtol=1e-4), (scores_f32, ref)

    # bf16 matmul-input path (f32 accumulation / LN / sigmoid): looser tolerance.
    scores_bf16 = jax.block_until_ready(
        mlp_prediction_head(h, src_idx, dst_idx, params,
                            use_layer_norm=True, compute_dtype=jnp.bfloat16))
    assert scores_bf16.shape == (num_edges,)
    assert jnp.allclose(scores_bf16, ref, atol=2e-2, rtol=0.0), (scores_bf16, ref)

    # --- multi-tile config: >= 2 "parallel" edge tiles (both TCs on v7x) ---
    h_feats2, hidden2, num_nodes2, num_edges2 = 32, 64, 64, 700
    h2 = jax.random.normal(k_h2, (num_nodes2, h_feats2), jnp.float32)
    src2 = jax.random.randint(k_s2, (num_edges2,), 0, num_nodes2)
    dst2 = jax.random.randint(k_d2, (num_edges2,), 0, num_nodes2)
    params2 = make_params(k_p2, h_feats2, hidden2)
    ref2 = _reference(h2, src2, dst2, params2, use_layer_norm=True)

    scores2 = jax.block_until_ready(
        mlp_prediction_head(h2, src2, dst2, params2, use_layer_norm=True))
    assert scores2.shape == (num_edges2,)
    assert jnp.allclose(scores2, ref2, atol=2e-2, rtol=0.0), (scores2, ref2)

    print("KERNEL_OK")
</pallas_src>

<mosaic_0001>
module attributes {stable_mosaic.version = 11 : i64} {
  func.func @mlp_head_kernel(%arg0: i32, %arg1: memref<32x128xf32, #tpu.memory_space<vmem>>, %arg2: memref<32x128xf32, #tpu.memory_space<vmem>>, %arg3: memref<32x32xf32, #tpu.memory_space<vmem>>, %arg4: memref<32x32xf32, #tpu.memory_space<vmem>>, %arg5: memref<32x8xf32, #tpu.memory_space<vmem>>, %arg6: memref<1x128xf32, #tpu.memory_space<vmem>>) attributes {dimension_semantics = [#tpu.dimension_semantics<parallel>], iteration_bounds = array<i64: 1>, scalar_prefetch = 0 : i64, scratch_operands = 0 : i64, tpu.core_type = #tpu.core_type<tc>, window_params = [{transform_indices = @transform_0, window_bounds = array<i64: 32, 128>}, {transform_indices = @transform_1, window_bounds = array<i64: 32, 128>}, {pipeline_mode = #tpu.pipeline_mode<synchronous>, transform_indices = @transform_2, window_bounds = array<i64: 32, 32>}, {pipeline_mode = #tpu.pipeline_mode<synchronous>, transform_indices = @transform_3, window_bounds = array<i64: 32, 32>}, {pipeline_mode = #tpu.pipeline_mode<synchronous>, transform_indices = @transform_4, window_bounds = array<i64: 32, 8>}, {transform_indices = @transform_5, window_bounds = array<i64: 1, 128>}]} {
    %c0 = arith.constant 0 : index
    %c0_0 = arith.constant 0 : index
    %0 = vector.load %arg1[%c0, %c0_0] : memref<32x128xf32, #tpu.memory_space<vmem>>, vector<32x128xf32>
    %c0_1 = arith.constant 0 : index
    %c0_2 = arith.constant 0 : index
    %1 = vector.load %arg2[%c0_1, %c0_2] : memref<32x128xf32, #tpu.memory_space<vmem>>, vector<32x128xf32>
    %2 = arith.mulf %0, %1 : vector<32x128xf32>
    %c0_3 = arith.constant 0 : index
    %c0_4 = arith.constant 0 : index
    %3 = vector.load %arg5[%c0_3, %c0_4] : memref<32x8xf32, #tpu.memory_space<vmem>>, vector<32x8xf32>
    %4 = vector.extract_strided_slice %3 {offsets = [0, 0], sizes = [32, 1], strides = [1, 1]} : vector<32x8xf32> to vector<32x1xf32>
    %5 = vector.extract_strided_slice %3 {offsets = [0, 1], sizes = [32, 1], strides = [1, 1]} : vector<32x8xf32> to vector<32x1xf32>
    %6 = vector.extract_strided_slice %3 {offsets = [0, 2], sizes = [32, 1], strides = [1, 1]} : vector<32x8xf32> to vector<32x1xf32>
    %7 = vector.extract_strided_slice %3 {offsets = [0, 3], sizes = [32, 1], strides = [1, 1]} : vector<32x8xf32> to vector<32x1xf32>
    %8 = vector.extract_strided_slice %3 {offsets = [0, 4], sizes = [32, 1], strides = [1, 1]} : vector<32x8xf32> to vector<32x1xf32>
    %9 = vector.extract_strided_slice %3 {offsets = [0, 5], sizes = [32, 1], strides = [1, 1]} : vector<32x8xf32> to vector<32x1xf32>
    %10 = vector.extract_strided_slice %3 {offsets = [0, 6], sizes = [32, 1], strides = [1, 1]} : vector<32x8xf32> to vector<32x1xf32>
    %11 = vector.extract_strided_slice %3 {offsets = [0, 7], sizes = [1, 1], strides = [1, 1]} : vector<32x8xf32> to vector<1x1xf32>
    %c0_5 = arith.constant 0 : index
    %c0_6 = arith.constant 0 : index
    %12 = vector.load %arg3[%c0_5, %c0_6] : memref<32x32xf32, #tpu.memory_space<vmem>>, vector<32x32xf32>
    %cst = arith.constant dense<0.000000e+00> : vector<32x128xf32>
    %13 = tpu.matmul %12, %2, %cst {dimension_numbers = #tpu.dot_dimension_numbers<[1], [0], [0], [1], [0, 0, 1, 1], [], []>} : vector<32x32xf32>, vector<32x128xf32>, vector<32x128xf32> -> vector<32x128xf32>
    %14 = vector.broadcast %4 : vector<32x1xf32> to vector<32x128xf32>
    %15 = arith.addf %13, %14 : vector<32x128xf32>
    %cst_7 = arith.constant dense<0.000000e+00> : vector<128xf32>
    %16 = vector.multi_reduction <add>, %15, %cst_7 [0] : vector<32x128xf32> to vector<128xf32>
    %17 = vector.shape_cast %16 : vector<128xf32> to vector<1x128xf32>
    %cst_8 = arith.constant 3.200000e+01 : f32
    %18 = vector.broadcast %cst_8 : f32 to vector<1x128xf32>
    %19 = arith.divf %17, %18 : vector<1x128xf32>
    %20 = arith.mulf %15, %15 : vector<32x128xf32>
    %cst_9 = arith.constant dense<0.000000e+00> : vector<128xf32>
    %21 = vector.multi_reduction <add>, %20, %cst_9 [0] : vector<32x128xf32> to vector<128xf32>
    %22 = vector.shape_cast %21 : vector<128xf32> to vector<1x128xf32>
    %cst_10 = arith.constant 3.200000e+01 : f32
    %23 = vector.broadcast %cst_10 : f32 to vector<1x128xf32>
    %24 = arith.divf %22, %23 : vector<1x128xf32>
    %25 = arith.mulf %19, %19 : vector<1x128xf32>
    %26 = arith.subf %24, %25 : vector<1x128xf32>
    %cst_11 = arith.constant 0.000000e+00 : f32
    %27 = vector.broadcast %cst_11 : f32 to vector<1x128xf32>
    %28 = arith.maximumf %26, %27 : vector<1x128xf32>
    %29 = vector.broadcast %19 : vector<1x128xf32> to vector<32x128xf32>
    %30 = arith.subf %15, %29 : vector<32x128xf32>
    %cst_12 = arith.constant 9.99999974E-6 : f32
    %31 = vector.broadcast %cst_12 : f32 to vector<1x128xf32>
    %32 = arith.addf %28, %31 : vector<1x128xf32>
    %33 = math.rsqrt %32 : vector<1x128xf32>
    %34 = vector.broadcast %33 : vector<1x128xf32> to vector<32x128xf32>
    %35 = arith.mulf %30, %34 : vector<32x128xf32>
    %36 = vector.broadcast %5 : vector<32x1xf32> to vector<32x128xf32>
    %37 = arith.mulf %35, %36 : vector<32x128xf32>
    %38 = vector.broadcast %6 : vector<32x1xf32> to vector<32x128xf32>
    %39 = arith.addf %37, %38 : vector<32x128xf32>
    %cst_13 = arith.constant 0.000000e+00 : f32
    %40 = vector.broadcast %cst_13 : f32 to vector<32x128xf32>
    %41 = arith.maximumf %39, %40 : vector<32x128xf32>
    %c0_14 = arith.constant 0 : index
    %c0_15 = arith.constant 0 : index
    %42 = vector.load %arg4[%c0_14, %c0_15] : memref<32x32xf32, #tpu.memory_space<vmem>>, vector<32x32xf32>
    %cst_16 = arith.constant dense<0.000000e+00> : vector<32x128xf32>
    %43 = tpu.matmul %42, %41, %cst_16 {dimension_numbers = #tpu.dot_dimension_numbers<[1], [0], [0], [1], [0, 0, 1, 1], [], []>} : vector<32x32xf32>, vector<32x128xf32>, vector<32x128xf32> -> vector<32x128xf32>
    %44 = vector.broadcast %7 : vector<32x1xf32> to vector<32x128xf32>
    %45 = arith.addf %43, %44 : vector<32x128xf32>
    %cst_17 = arith.constant dense<0.000000e+00> : vector<128xf32>
    %46 = vector.multi_reduction <add>, %45, %cst_17 [0] : vector<32x128xf32> to vector<128xf32>
    %47 = vector.shape_cast %46 : vector<128xf32> to vector<1x128xf32>
    %cst_18 = arith.constant 3.200000e+01 : f32
    %48 = vector.broadcast %cst_18 : f32 to vector<1x128xf32>
    %49 = arith.divf %47, %48 : vector<1x128xf32>
    %50 = arith.mulf %45, %45 : vector<32x128xf32>
    %cst_19 = arith.constant dense<0.000000e+00> : vector<128xf32>
    %51 = vector.multi_reduction <add>, %50, %cst_19 [0] : vector<32x128xf32> to vector<128xf32>
    %52 = vector.shape_cast %51 : vector<128xf32> to vector<1x128xf32>
    %cst_20 = arith.constant 3.200000e+01 : f32
    %53 = vector.broadcast %cst_20 : f32 to vector<1x128xf32>
    %54 = arith.divf %52, %53 : vector<1x128xf32>
    %55 = arith.mulf %49, %49 : vector<1x128xf32>
    %56 = arith.subf %54, %55 : vector<1x128xf32>
    %cst_21 = arith.constant 0.000000e+00 : f32
    %57 = vector.broadcast %cst_21 : f32 to vector<1x128xf32>
    %58 = arith.maximumf %56, %57 : vector<1x128xf32>
    %59 = vector.broadcast %49 : vector<1x128xf32> to vector<32x128xf32>
    %60 = arith.subf %45, %59 : vector<32x128xf32>
    %cst_22 = arith.constant 9.99999974E-6 : f32
    %61 = vector.broadcast %cst_22 : f32 to vector<1x128xf32>
    %62 = arith.addf %58, %61 : vector<1x128xf32>
    %63 = math.rsqrt %62 : vector<1x128xf32>
    %64 = vector.broadcast %63 : vector<1x128xf32> to vector<32x128xf32>
    %65 = arith.mulf %60, %64 : vector<32x128xf32>
    %66 = vector.broadcast %8 : vector<32x1xf32> to vector<32x128xf32>
    %67 = arith.mulf %65, %66 : vector<32x128xf32>
    %68 = vector.broadcast %9 : vector<32x1xf32> to vector<32x128xf32>
    %69 = arith.addf %67, %68 : vector<32x128xf32>
    %cst_23 = arith.constant 0.000000e+00 : f32
    %70 = vector.broadcast %cst_23 : f32 to vector<32x128xf32>
    %71 = arith.maximumf %69, %70 : vector<32x128xf32>
    %72 = vector.broadcast %10 : vector<32x1xf32> to vector<32x128xf32>
    %73 = arith.mulf %71, %72 : vector<32x128xf32>
    %cst_24 = arith.constant dense<0.000000e+00> : vector<128xf32>
    %74 = vector.multi_reduction <add>, %73, %cst_24 [0] : vector<32x128xf32> to vector<128xf32>
    %75 = vector.shape_cast %74 : vector<128xf32> to vector<1x128xf32>
    %76 = vector.broadcast %11 : vector<1x1xf32> to vector<1x128xf32>
    %77 = arith.addf %75, %76 : vector<1x128xf32>
    %78 = arith.negf %77 : vector<1x128xf32>
    %79 = math.exp %78 : vector<1x128xf32>
    %cst_25 = arith.constant 1.000000e+00 : f32
    %80 = vector.broadcast %cst_25 : f32 to vector<1x128xf32>
    %81 = arith.addf %80, %79 : vector<1x128xf32>
    %82 = arith.divf %80, %81 : vector<1x128xf32>
    %c0_26 = arith.constant 0 : index
    %c0_27 = arith.constant 0 : index
    %83 = vector.load %arg6[%c0_26, %c0_27] : memref<1x128xf32, #tpu.memory_space<vmem>>, vector<1x128xf32>
    tpu.vector_store %arg6[%c0_26, %c0_27], %82 {strides = array<i32>} : memref<1x128xf32, #tpu.memory_space<vmem>>, vector<1x128xf32>,
    return
  }
  func.func @transform_0(%arg0: i32) -> (i32, i32) {
    %c0_i32 = arith.constant 0 : i32
    %c0_i32_0 = arith.constant 0 : i32
    return %c0_i32, %arg0 : i32, i32
  }
  func.func @transform_1(%arg0: i32) -> (i32, i32) {
    %c0_i32 = arith.constant 0 : i32
    %c0_i32_0 = arith.constant 0 : i32
    return %c0_i32, %arg0 : i32, i32
  }
  func.func @transform_2(%arg0: i32) -> (i32, i32) {
    %c0_i32 = arith.constant 0 : i32
    %c0_i32_0 = arith.constant 0 : i32
    %c0_i32_1 = arith.constant 0 : i32
    return %c0_i32, %c0_i32_0 : i32, i32
  }
  func.func @transform_3(%arg0: i32) -> (i32, i32) {
    %c0_i32 = arith.constant 0 : i32
    %c0_i32_0 = arith.constant 0 : i32
    %c0_i32_1 = arith.constant 0 : i32
    return %c0_i32, %c0_i32_0 : i32, i32
  }
  func.func @transform_4(%arg0: i32) -> (i32, i32) {
    %c0_i32 = arith.constant 0 : i32
    %c0_i32_0 = arith.constant 0 : i32
    %c0_i32_1 = arith.constant 0 : i32
    return %c0_i32, %c0_i32_0 : i32, i32
  }
  func.func @transform_5(%arg0: i32) -> (i32, i32) {
    %c0_i32 = arith.constant 0 : i32
    %c0_i32_0 = arith.constant 0 : i32
    return %c0_i32, %arg0 : i32, i32
  }
}

</mosaic_0001>

<bundles_post_ra>
// kernel: tpu_custom_call.1
= control target key start
LH: loop header
LB: loop body
LE: loop exit
PB: predicated region body
PF: predicated region fallthrough
CT: control target
= control target key end

     0   :  { %10 = vsyncpa [#allocation3], 0  ;;  %s900_s0 = inlined_call_operand.vmem [shape: f32[32,128], index: 0, kind: input, shape index: {}]   ;;  %s901_s1 = inlined_call_operand.hbm [shape: f32[32,128], index: 1, kind: input, shape index: {}]   ;;  %s902_s2 = inlined_call_operand.hbm [shape: f32[32,32], index: 2, kind: input, shape index: {}]   ;;  %s903_s3 = inlined_call_operand.hbm [shape: f32[32,32], index: 3, kind: input, shape index: {}]   ;;  %s904_s4 = inlined_call_operand.vmem [shape: f32[32,8], index: 4, kind: input, shape index: {}]   ;;  %s905_s5 = inlined_call_operand.hbm [shape: f32[1,128], index: 5, kind: output, shape index: {}]  }
   0x1   :  { %11 = vsyncpa [#allocation6], 0 }
   0x2   :  { %12 = vsyncpa [#allocation4], 0  ;;  %s741_s18 = smov [#allocation5]   ;;  %s742_s20 = smov [#allocation2]  }
   0x3   :  { %s32_s19 = sshll.u32 %s741_s18, 4  ;;  %s20_s21 = sshll.u32 %s742_s20, 4  ;;  %s33_s19 = int_to_ptr.vmem [resolvable:$true] %s32_s19  ;;  %s785_s21 = int_to_ptr.vmem [resolvable:$true] %s20_s21 }
   0x4   :  { %s647_s24 = scalar_lea.hbm %s902_s2, 512 }
   0x5   :  { %p648_p0 = scmp.ne.s32.totalorder %s902_s2, %s647_s24  ;;  %p651_p1 = scmp.lt.u32.totalorder %s647_s24, %s902_s2 }
   0x7   :  { %p653_p2 = pnand %p651_p1, %p648_p0 }
   0x9   :  { %656 = shalt.err (!%p653_p2)
}
   0xa   :  { %s657_s29 = scalar_lea.vmem %s33_s19, 512  ;;  %p662_p4 = scmp.lt.s32.totalorder %s33_s19, %s33_s19 }
   0xb   :  { %p658_p3 = scmp.ne.s32.totalorder %s33_s19, %s657_s29  ;;  %p663_p5 = scmp.lt.s32.totalorder %s657_s29, %s657_s29 }
   0xd   :  { %p664_p6 = por %p663_p5, %p662_p4 }
   0xf   :  { %p665_p7 = pnand %p664_p6, %p658_p3 }
  0x11   :  { %668 = shalt.err (!%p665_p7)
}
  0x12   :  { %s743_s30 = smov 128   ;;  %s744_s6 = smov 8  }
  0x13   :  { %38 = dma.hbm_to_vmem [thread:$0]  %s902_s2, 512, %s33_s19, [#allocation6], %s743_s30, %s743_s30, %s744_s6  }
  0x14   :  { %s669_s11 = scalar_lea.hbm %s901_s1, 512 }
  0x15   :  { %p670_p8 = scmp.ne.s32.totalorder %s901_s1, %s669_s11  ;;  %p673_p9 = scmp.lt.u32.totalorder %s669_s11, %s901_s1 }
  0x17   :  { %p675_p10 = pnand %p673_p9, %p670_p8 }
  0x19   :  { %678 = shalt.err (!%p675_p10)
}
  0x1a   :  { %s679_s16 = scalar_lea.vmem %s785_s21, 512  ;;  %p684_p12 = scmp.lt.s32.totalorder %s785_s21, %s785_s21 }
  0x1b   :  { %p680_p11 = scmp.ne.s32.totalorder %s785_s21, %s679_s16  ;;  %p685_p13 = scmp.lt.s32.totalorder %s679_s16, %s679_s16 }
  0x1d   :  { %p686_p0 = por %p685_p13, %p684_p12 }
  0x1f   :  { %p687_p1 = pnand %p686_p0, %p680_p11 }
  0x21   :  { %690 = shalt.err (!%p687_p1)
}
  0x22   :  { %26 = dma.hbm_to_vmem [thread:$0]  %s901_s1, 512, %s785_s21, [#allocation3], %s743_s30, %s743_s30, %s744_s6  }
  0x23   :  { %s745_s18 = smov [#allocation7]   ;;  %s691_s23 = scalar_lea.hbm %s903_s3, 512 }
  0x24   :  { %s44_s19 = sshll.u32 %s745_s18, 4  ;;  %p692_p2 = scmp.ne.s32.totalorder %s903_s3, %s691_s23  ;;  %s45_s19 = int_to_ptr.vmem [resolvable:$true] %s44_s19 }
  0x25   :  { %p695_p3 = scmp.lt.u32.totalorder %s691_s23, %s903_s3 }
  0x27   :  { %p697_p4 = pnand %p695_p3, %p692_p2 }
  0x29   :  { %700 = shalt.err (!%p697_p4)
}
  0x2a   :  { %s701_s28 = scalar_lea.vmem %s45_s19, 512  ;;  %p706_p6 = scmp.lt.s32.totalorder %s45_s19, %s45_s19 }
  0x2b   :  { %p702_p5 = scmp.ne.s32.totalorder %s45_s19, %s701_s28  ;;  %p707_p7 = scmp.lt.s32.totalorder %s701_s28, %s701_s28 }
  0x2d   :  { %p708_p8 = por %p707_p7, %p706_p6 }
  0x2f   :  { %p709_p9 = pnand %p708_p8, %p702_p5 }
  0x31   :  { %712 = shalt.err (!%p709_p9)
}
  0x32   :  { %50 = dma.hbm_to_vmem [thread:$0]  %s903_s3, 512, %s45_s19, [#allocation6], %s743_s30, %s743_s30, %s744_s6  }
  0x33   :  { %735 = dma.done.wait [#allocation3], 512  }
  0x34   :  { %736 = vsyncadd [#allocation3], 4294966784 }
  0x35   :  { %737 = dma.done.wait [#allocation6], 1024  }
  0x36   :  { %738 = vsyncadd [#allocation6], 4294966272  ;;  %v746_v0 = vmov 0   ;;  %v62_v1 = vld [vmem:[%s900_s0] sm:$0xff]  ;;  %v63_v2 = vld [vmem:[%s900_s0 + $0x8] sm:$0xff]  ;;  %vm102_vm0 = vcmask 261120  }
  0x37   :  { %620 = vset.pattern.permute.xlu0 %v746_v0  ;;  %621 = vset.pattern.permute.xlu1 %v746_v0  ;;  %v66_v3 = vld [vmem:[#allocation2] sm:$0xff]  ;;  %v67_v4 = vld [vmem:[#allocation2 + $0x8] sm:$0xff]  ;;  %v64_v6 = vld [vmem:[%s900_s0 + $0x10] sm:$0xff]  ;;  %v747_v22 = vmov 1   ;;  %v748_v24 = vmov 2   ;;  %v749_v26 = vmov 3  }
  0x38   :  { %v70_v5 = vmul.f32 %v66_v3, %v62_v1  ;;  %v65_v7 = vld [vmem:[%s900_s0 + $0x18] sm:$0xff]  ;;  %v71_v8 = vmul.f32 %v67_v4, %v63_v2  ;;  %v68_v9 = vld [vmem:[#allocation2 + $0x10] sm:$0xff]  ;;  %v78_v11 = vld [vmem:[#allocation5] sm:$0xff]  ;;  %v750_v27 = vmov 4   ;;  %v751_v28 = vmov 5  }
  0x39   :  { %v69_v10 = vld [vmem:[#allocation2 + $0x18] sm:$0xff]  ;;  %v72_v12 = vmul.f32 %v68_v9, %v64_v6  ;;  %570 = vmatprep.mubr.msk.f32.mxu0 %vm102_vm0, %v78_v11  ;;  %v853_v15 = vld [vmem:[%s904_s4] sm:$0xff]  ;;  %v858_v16 = vld [vmem:[%s904_s4 + $0x10] sm:$0xff]  ;;  %v752_v29 = vmov 6   ;;  %v753_v30 = vmov 7  }
  0x3a   :  { %v73_v13 = vmul.f32 %v69_v10, %v65_v7  ;;  %v590_v14 = vpack.c.bf16 %v71_v8, %v70_v5  ;;  %84 = vperm.xlu0 %620, %v853_v15   ;;  %94 = vperm.xlu1 %621, %v858_v16   ;;  %v75_v18 = vld [vmem:[%s904_s4 + $0x8] sm:$0xff]  ;;  %v77_v19 = vld [vmem:[%s904_s4 + $0x18] sm:$0xff]  ;;  %v80_v21 = vld [vmem:[#allocation5 + $0x10] sm:$0xff]  ;;  %s754_s4 = smov [#allocation8]  }
  0x3b   :  { %v79_v20 = vld [vmem:[#allocation5 + $0x8] sm:$0xff]  ;;  %v81_v23 = vld [vmem:[#allocation5 + $0x18] sm:$0xff]  ;;  %v282_v25 = vld [vmem:[#allocation7] sm:$0xff]  ;;  %s527_s17 = sshll.u32 %s754_s4, 4  ;;  %s528_s17 = int_to_ptr.vmem [resolvable:$true] %s527_s17 }
  0x3c   :  { %v594_v17 = vpack.c.bf16 %v73_v13, %v72_v12  ;;  %591 = vmatprep.subr.bf16.mxu0 %v590_v14  ;;  %584 = vmatprep.mubr.msk.f32.mxu1 %vm102_vm0, %v282_v25  ;;  %s713_s18 = scalar_lea.vmem %s528_s17, 16  ;;  %s717_s19 = scalar_lea.vmem %s528_s17, 32 }
  0x3d   :  { %593 = vmatpush3.bf16.msra.mxu0 %v590_v14  ;;  %p714_p10 = scmp.ne.s32.totalorder %s528_s17, %s713_s18  ;;  %p718_p11 = scmp.lt.s32.totalorder %s528_s17, %s528_s17 }
  0x3e   :  { %595 = vmatprep.subr.bf16.mxu0 %v594_v17  ;;  %89 = vperm.xlu0 %620, %v75_v18   ;;  %p719_p12 = scmp.lt.s32.totalorder %s717_s19, %s713_s18 }
  0x3f   :  { %99 = vperm.xlu1 %621, %v77_v19  }
  0x40   :  { %p720_p13 = por %p719_p12, %p718_p11 }
  0x41   :  { %597 = vmatpush3.bf16.msra.mxu0 %v594_v17 }
  0x42   :  { %622 = vset.pattern.permute.xlu0 %v747_v22  ;;  %p721_p0 = pnand %p720_p13, %p714_p10 }
  0x43   :  { %623 = vset.pattern.permute.xlu1 %v747_v22  ;;  %239 = vperm.xlu0 %622, %v853_v15  }
  0x44   :  { %571 = vmatmul.mubr.msk.f32.vlgmr.msra.gmra.mrb[0].mxu0 %vm102_vm0, %v79_v20  ;;  %243 = vperm.xlu1 %623, %v75_v18  }
  0x45   :  { %573 = vmatprep.mubr.msk.f32.mxu0 %vm102_vm0, %v80_v21 }
  0x47   :  { %625 = vset.pattern.permute.xlu0 %v748_v24 }
  0x48   :  { %574 = vmatmul.mubr.msk.f32.gmra.mrb[2].mxu0 %vm102_vm0, %v81_v23  ;;  %624 = vset.pattern.permute.xlu1 %v748_v24 }
  0x49   :  { %259 = vperm.xlu1 %624, %v853_v15   ;;  %263 = vperm.xlu0 %625, %v75_v18  }
  0x4d   :  { %626 = vset.pattern.permute.xlu1 %v747_v22  ;;  %267 = vperm.xlu0 %625, %v858_v16  }
  0x4e   :  { %247 = vperm.xlu1 %626, %v858_v16  }
  0x51   :  { %628 = vset.pattern.permute.xlu0 %v749_v26 }
  0x52   :  { %251 = vperm.xlu1 %626, %v77_v19   ;;  %287 = vperm.xlu0 %628, %v853_v15  }
  0x56   :  { %627 = vset.pattern.permute.xlu1 %v748_v24  ;;  %299 = vperm.xlu0 %628, %v77_v19  }
  0x57   :  { %271 = vperm.xlu1 %627, %v77_v19  }
  0x5a   :  { %631 = vset.pattern.permute.xlu0 %v750_v27 }
  0x5b   :  { %629 = vset.pattern.permute.xlu1 %v749_v26  ;;  %441 = vperm.xlu0 %631, %v75_v18  }
  0x5c   :  { %291 = vperm.xlu1 %629, %v75_v18  }
  0x5f   :  { %633 = vset.pattern.permute.xlu0 %v751_v28 }
  0x60   :  { %295 = vperm.xlu1 %629, %v858_v16   ;;  %461 = vperm.xlu0 %633, %v75_v18  }
  0x64   :  { %630 = vset.pattern.permute.xlu1 %v750_v27  ;;  %469 = vperm.xlu0 %633, %v77_v19  }
  0x65   :  { %437 = vperm.xlu1 %630, %v853_v15  }
  0x68   :  { %637 = vset.pattern.permute.xlu0 %v752_v29 }
  0x69   :  { %445 = vperm.xlu1 %630, %v858_v16   ;;  %485 = vperm.xlu0 %637, %v75_v18  }
  0x6d   :  { %632 = vset.pattern.permute.xlu1 %v751_v28  ;;  %638 = vset.pattern.permute.xlu0 %v753_v30 }
  0x6e   :  { %457 = vperm.xlu1 %632, %v853_v15   ;;  %510 = vperm.xlu0 %638, %v853_v15  }
  0x72   :  { %634 = vset.pattern.permute.xlu1 %v750_v27 }
  0x73   :  { %449 = vperm.xlu1 %634, %v77_v19  }
  0x77   :  { %635 = vset.pattern.permute.xlu1 %v751_v28 }
  0x78   :  { %465 = vperm.xlu1 %635, %v858_v16  }
  0x7c   :  { %636 = vset.pattern.permute.xlu1 %v752_v29 }
  0x7d   :  { %481 = vperm.xlu1 %636, %v853_v15  }
  0x81   :  { %489 = vperm.xlu1 %636, %v858_v16  }
  0x85   :  { %493 = vperm.xlu1 %636, %v77_v19  }
  0xb9   :  { %v85_v31 = vpop.permute.xlu0 %84  ;;  %v95_v32 = vpop.permute.xlu1 %94 }
  0xbd   :  { %v90_v33 = vpop.permute.xlu0 %89 }
  0xbe   :  { %v100_v39 = vpop.permute.xlu1 %99 }
  0xc2   :  { %v240_v14 = vpop.permute.xlu0 %239 }
  0xc3   :  { %v244_v0 = vpop.permute.xlu1 %243 }
  0xc8   :  { %v260_v10 = vpop.permute.xlu1 %259  ;;  %v264_v16 = vpop.permute.xlu0 %263 }
  0xcc   :  { %v268_v23 = vpop.permute.xlu0 %267 }
  0xcd   :  { %v248_v13 = vpop.permute.xlu1 %247 }
  0xd1   :  { %v252_v15 = vpop.permute.xlu1 %251 }
  0xd6   :  { %v272_v22 = vpop.permute.xlu1 %271 }
 0x117   :  { %v572_v34 = vpop.f32.mrb[0].mxu0 }
 0x118   :  { %v187_v35 = vadd.f32 %v572_v34, %v90_v33  ;;  %v181_v36 = vpop.f32.mrb[1].mxu0 }
 0x119   :  { %v182_v37 = vadd.f32 %v181_v36, %v85_v31 }
 0x11a   :  { %v212_v38 = vmul.f32 %v187_v35, %v187_v35 }
 0x11b   :  { %v200_v40 = vadd.f32 %v187_v35, %v182_v37  ;;  %v211_v41 = vmul.f32 %v182_v37, %v182_v37  ;;  %v575_v42 = vpop.f32.mrb[2].mxu0 }
 0x11c   :  { %v191_v43 = vpop.f32.mrb[3].mxu0  ;;  %v197_v45 = vadd.f32 %v575_v42, %v100_v39  ;;  %v284_v39 = vld [vmem:[#allocation7 + $0x10] sm:$0xff]  ;;  %v292_v42 = vpop.permute.xlu1 %291 }
 0x11d   :  { %v215_v44 = vadd.f32 %v212_v38, %v211_v41  ;;  %v192_v46 = vadd.f32 %v191_v43, %v95_v32  ;;  %v283_v38 = vld [vmem:[#allocation7 + $0x8] sm:$0xff]  ;;  %v288_v41 = vpop.permute.xlu0 %287 }
 0x11e   :  { %v214_v49 = vmul.f32 %v197_v45, %v197_v45 }
 0x11f   :  { %v201_v47 = vadd.f32 %v200_v40, %v192_v46  ;;  %v213_v48 = vmul.f32 %v192_v46, %v192_v46  ;;  %v285_v40 = vld [vmem:[#allocation7 + $0x18] sm:$0xff] }
 0x121   :  { %v202_v50 = vadd.f32 %v201_v47, %v197_v45  ;;  %v216_v51 = vadd.f32 %v215_v44, %v213_v48  ;;  %v300_v48 = vpop.permute.xlu0 %299 }
 0x123   :  { %v203_v52 = vrot.slane %v202_v50, 4  ;;  %v217_v53 = vadd.f32 %v216_v51, %v214_v49 }
 0x125   :  { %v204_v54 = vadd.f32 %v203_v52, %v202_v50  ;;  %v218_v55 = vrot.slane %v217_v53, 4  ;;  %v296_v52 = vpop.permute.xlu1 %295 }
 0x127   :  { %v205_v56 = vrot.slane %v204_v54, 2  ;;  %v219_v57 = vadd.f32 %v218_v55, %v217_v53 }
 0x129   :  { %v206_v58 = vadd.f32 %v205_v56, %v204_v54  ;;  %v220_v59 = vrot.slane %v219_v57, 2 }
 0x12b   :  { %v207_v60 = vrot.slane %v206_v58, 1  ;;  %v221_v61 = vadd.f32 %v220_v59, %v219_v57 }
 0x12d   :  { %v208_v62 = vadd.f32 %v207_v60, %v206_v58  ;;  %v222_v63 = vrot.slane %v221_v61, 1 }
 0x12f   :  { %v210_v1 = vmul.f32 0.03125, %v208_v62  ;;  %v223_v2 = vadd.f32 %v222_v63, %v221_v61 }
 0x131   :  { %v224_v3 = vmul.f32 0.03125, %v223_v2  ;;  %v225_v4 = vmul.f32 %v210_v1, %v210_v1  ;;  %v229_v5 = vsub.f32 %v187_v35, %v210_v1  ;;  %v230_v6 = vsub.f32 %v192_v46, %v210_v1  ;;  %v438_v2 = vpop.permute.xlu1 %437 }
 0x132   :  { %v228_v7 = vsub.f32 %v182_v37, %v210_v1  ;;  %v231_v8 = vsub.f32 %v197_v45, %v210_v1 }
 0x133   :  { %v226_v9 = vsub.f32 %v224_v3, %v225_v4 }
 0x135   :  { %v227_v11 = vmax.f32 %v226_v9, 0.0  ;;  %v446_v9 = vpop.permute.xlu1 %445 }
 0x137   :  { %v232_v12 = vadd.f32 1e-05, %v227_v11 }
 0x139   :  { %639 = vrsqrt.f32 %v232_v12 }
 0x143   :  { %v640_v17 = vpop.eup %639 }
 0x144   :  { %v235_v18 = vmul.f32 %v640_v17, %v229_v5  ;;  %v236_v19 = vmul.f32 %v640_v17, %v230_v6  ;;  %v234_v20 = vmul.f32 %v640_v17, %v228_v7  ;;  %v237_v21 = vmul.f32 %v640_v17, %v231_v8 }
 0x146   :  { %v255_v24 = vmul.f32 %v244_v0, %v235_v18  ;;  %v256_v25 = vmul.f32 %v248_v13, %v236_v19  ;;  %v254_v26 = vmul.f32 %v240_v14, %v234_v20  ;;  %v257_v27 = vmul.f32 %v252_v15, %v237_v21  ;;  %v458_v18 = vpop.permute.xlu1 %457 }
 0x148   :  { %v274_v28 = vadd.f32 %v260_v10, %v254_v26  ;;  %v275_v29 = vadd.f32 %v264_v16, %v255_v24  ;;  %v277_v30 = vadd.f32 %v272_v22, %v257_v27  ;;  %v276_v31 = vadd.f32 %v268_v23, %v256_v25  ;;  %v442_v25 = vpop.permute.xlu0 %441 }
 0x14a   :  { %v278_v32 = vmax.f32 %v274_v28, 0.0  ;;  %v279_v33 = vmax.f32 %v275_v29, 0.0  ;;  %v281_v34 = vmax.f32 %v277_v30, 0.0  ;;  %v280_v35 = vmax.f32 %v276_v31, 0.0  ;;  %v450_v24 = vpop.permute.xlu1 %449 }
 0x14c   :  { %v602_v36 = vpack.c.bf16 %v281_v34, %v280_v35  ;;  %v598_v37 = vpack.c.bf16 %v279_v33, %v278_v32  ;;  %v462_v27 = vpop.permute.xlu0 %461 }
 0x14e   :  { %599 = vmatprep.subr.bf16.mxu1 %v598_v37  ;;  %v466_v26 = vpop.permute.xlu1 %465 }
 0x14f   :  { %601 = vmatpush3.bf16.msra.mxu1 %v598_v37 }
 0x150   :  { %603 = vmatprep.subr.bf16.mxu1 %v602_v36  ;;  %v470_v34 = vpop.permute.xlu0 %469 }
 0x152   :  { %v482_v29 = vpop.permute.xlu1 %481 }
 0x153   :  { %605 = vmatpush3.bf16.msra.mxu1 %v602_v36 }
 0x156   :  { %585 = vmatmul.mubr.msk.f32.vlgmr.msra.gmra.mrb[0].mxu1 %vm102_vm0, %v283_v38 }
 0x157   :  { %587 = vmatprep.mubr.msk.f32.mxu1 %vm102_vm0, %v284_v39 }
 0x15a   :  { %588 = vmatmul.mubr.msk.f32.gmra.mrb[2].mxu1 %vm102_vm0, %v285_v40 }
 0x229   :  { %v586_v43 = vpop.f32.mrb[0].mxu1 }
 0x22a   :  { %v386_v44 = vadd.f32 %v586_v43, %v292_v42  ;;  %v380_v45 = vpop.f32.mrb[1].mxu1  ;;  %v490_v43 = vpop.permute.xlu1 %489 }
 0x22b   :  { %v381_v46 = vadd.f32 %v380_v45, %v288_v41 }
 0x22c   :  { %v410_v47 = vmul.f32 %v386_v44, %v386_v44 }
 0x22d   :  { %v399_v49 = vadd.f32 %v386_v44, %v381_v46  ;;  %v409_v50 = vmul.f32 %v381_v46, %v381_v46  ;;  %v589_v51 = vpop.f32.mrb[2].mxu1 }
 0x22e   :  { %v390_v53 = vpop.f32.mrb[3].mxu1  ;;  %v396_v55 = vadd.f32 %v589_v51, %v300_v48 }
 0x22f   :  { %v413_v54 = vadd.f32 %v410_v47, %v409_v50  ;;  %v391_v56 = vadd.f32 %v390_v53, %v296_v52  ;;  %v494_v53 = vpop.permute.xlu1 %493 }
 0x230   :  { %v412_v59 = vmul.f32 %v396_v55, %v396_v55 }
 0x231   :  { %v400_v57 = vadd.f32 %v399_v49, %v391_v56  ;;  %v411_v58 = vmul.f32 %v391_v56, %v391_v56 }
 0x233   :  { %v401_v60 = vadd.f32 %v400_v57, %v396_v55  ;;  %v414_v61 = vadd.f32 %v413_v54, %v411_v58 }
 0x235   :  { %v402_v62 = vrot.slane %v401_v60, 4  ;;  %v415_v63 = vadd.f32 %v414_v61, %v412_v59 }
 0x237   :  { %v403_v0 = vadd.f32 %v402_v62, %v401_v60  ;;  %v416_v1 = vrot.slane %v415_v63, 4 }
 0x239   :  { %v404_v3 = vrot.slane %v403_v0, 2  ;;  %v417_v4 = vadd.f32 %v416_v1, %v415_v63 }
 0x23b   :  { %v405_v5 = vadd.f32 %v404_v3, %v403_v0  ;;  %v418_v6 = vrot.slane %v417_v4, 2 }
 0x23d   :  { %v406_v7 = vrot.slane %v405_v5, 1  ;;  %v419_v8 = vadd.f32 %v418_v6, %v417_v4 }
 0x23f   :  { %v407_v10 = vadd.f32 %v406_v7, %v405_v5  ;;  %v420_v11 = vrot.slane %v419_v8, 1 }
 0x241   :  { %v408_v12 = vmul.f32 0.03125, %v407_v10  ;;  %v421_v13 = vadd.f32 %v420_v11, %v419_v8 }
 0x243   :  { %v422_v14 = vmul.f32 0.03125, %v421_v13  ;;  %v423_v15 = vmul.f32 %v408_v12, %v408_v12  ;;  %v426_v16 = vsub.f32 %v381_v46, %v408_v12  ;;  %v428_v17 = vsub.f32 %v391_v56, %v408_v12 }
 0x244   :  { %v429_v19 = vsub.f32 %v396_v55, %v408_v12  ;;  %v427_v20 = vsub.f32 %v386_v44, %v408_v12  ;;  %v486_v44 = vpop.permute.xlu0 %485 }
 0x245   :  { %v424_v21 = vsub.f32 %v422_v14, %v423_v15 }
 0x247   :  { %v425_v22 = vmax.f32 %v424_v21, 0.0 }
 0x248   :  { %v511_v62 = vpop.permute.xlu0 %510 }
 0x249   :  { %v430_v23 = vadd.f32 1e-05, %v425_v22 }
 0x24b   :  { %641 = vrsqrt.f32 %v430_v23 }
 0x255   :  { %v642_v28 = vpop.eup %641 }
 0x256   :  { %v432_v30 = vmul.f32 %v642_v28, %v426_v16  ;;  %v434_v31 = vmul.f32 %v642_v28, %v428_v17  ;;  %v435_v32 = vmul.f32 %v642_v28, %v429_v19  ;;  %v433_v33 = vmul.f32 %v642_v28, %v427_v20 }
 0x258   :  { %v452_v35 = vmul.f32 %v438_v2, %v432_v30  ;;  %v454_v36 = vmul.f32 %v446_v9, %v434_v31  ;;  %v455_v37 = vmul.f32 %v450_v24, %v435_v32  ;;  %v453_v38 = vmul.f32 %v442_v25, %v433_v33 }
 0x25a   :  { %v472_v39 = vadd.f32 %v458_v18, %v452_v35  ;;  %v474_v40 = vadd.f32 %v466_v26, %v454_v36  ;;  %v473_v41 = vadd.f32 %v462_v27, %v453_v38  ;;  %v475_v42 = vadd.f32 %v470_v34, %v455_v37 }
 0x25c   :  { %v476_v45 = vmax.f32 %v472_v39, 0.0  ;;  %v478_v46 = vmax.f32 %v474_v40, 0.0  ;;  %v477_v47 = vmax.f32 %v473_v41, 0.0  ;;  %v479_v49 = vmax.f32 %v475_v42, 0.0 }
 0x25e   :  { %v496_v48 = vmul.f32 %v482_v29, %v476_v45  ;;  %v497_v50 = vmul.f32 %v486_v44, %v477_v47  ;;  %v498_v51 = vmul.f32 %v490_v43, %v478_v46  ;;  %v499_v54 = vmul.f32 %v494_v53, %v479_v49 }
 0x260   :  { %v500_v52 = vadd.f32 %v497_v50, %v496_v48 }
 0x262   :  { %v501_v55 = vadd.f32 %v500_v52, %v498_v51 }
 0x264   :  { %v502_v56 = vadd.f32 %v501_v55, %v499_v54 }
 0x266   :  { %v503_v57 = vrot.slane %v502_v56, 4 }
 0x268   :  { %v504_v58 = vadd.f32 %v503_v57, %v502_v56 }
 0x26a   :  { %v505_v59 = vrot.slane %v504_v58, 2 }
 0x26c   :  { %v506_v60 = vadd.f32 %v505_v59, %v504_v58 }
 0x26e   :  { %v507_v61 = vrot.slane %v506_v60, 1 }
 0x270   :  { %v508_v63 = vadd.f32 %v507_v61, %v506_v60 }
 0x272   :  { %v513_v0 = vadd.f32 %v511_v62, %v508_v63 }
 0x274   :  { %v545_v1 = vmul.f32 -1.442695, %v513_v0 }
 0x276   :  { %643 = vpow2.f32 %v545_v1 }
 0x280   :  { %v644_v2 = vpop.eup %643 }
 0x281   :  { %v517_v3 = vadd.f32 1.0, %v644_v2 }
 0x283   :  { %645 = vrcp.f32 %v517_v3 }
 0x28d   :  { %v646_v4 = vpop.eup %645 }
 0x28e   :  { %520 = vst [vmem:[#allocation8] sm:$0x1] %v646_v4 }
 0x28f   :  { %724 = shalt.err (!%p721_p0)
}
 0x290   :  { %s725_s23 = scalar_lea.hbm %s905_s5, 16 }
 0x291   :  { %p726_p1 = scmp.ne.s32.totalorder %s905_s5, %s725_s23  ;;  %p729_p2 = scmp.lt.u32.totalorder %s725_s23, %s905_s5 }
 0x293   :  { %p731_p3 = pnand %p729_p2, %p726_p1 }
 0x295   :  { %734 = shalt.err (!%p731_p3)
}
 0x296   :  { %530 = dma.vmem_to_hbm [thread:$0]  %s528_s17, 16, %s905_s5, [#allocation4]  }
 0x297   :  { %739 = dma.done.wait [#allocation4], 16  }
 0x298   :  { %740 = vsyncadd [#allocation4], 4294967280 }
 0x299   :  { %534 = vsyncpa [#allocation3], 1 }
 0x29a   :  { %535 = vsyncpa [#allocation6], 1 }
 0x29b   :  { %536 = vsyncpa [#allocation4], 1 }

</bundles_post_ra>
